<compile_context>
chip_gen: v5e
topology: v5e:2x2
jax: 0.10.0
libtpu: 0.0.40
codegen_flags: <defaults>
</compile_context>

<pallas_src>
import functools
import math

import jax
import jax.numpy as jnp
import numpy as np
from jax.experimental import pallas as pl
from jax.experimental.pallas import tpu as pltpu


_FUSED_MAX_F32_BYTES = 2 << 20   # fused single-pass path if the f32 slab <= 2 MiB
_TILE_BYTES = 2 << 20            # ~2 MiB per streaming buffer (byte-budgeted tiles)
_VMEM_LIMIT = 32 << 20           # scoped VMEM limit; safe on v5e/v6e/v7x
_STATS_PARTS = 2                 # shard the stats pass across v7x's two TensorCores


# --------------------------------------------------------------------------
# In-kernel helpers (traced only inside kernels)
# --------------------------------------------------------------------------
def _combine_groups(v, groups, emb):
    """v: [1, groups*emb] per-lane partials -> per-channel totals replicated into
    every lane group.  `groups` is a power of two, so log2(groups) cyclic lane
    rotations (XLU slot, essentially free next to the HBM stream) suffice."""
    g, shift = groups, emb
    while g > 1:
        v = v + pltpu.roll(v, shift=shift, axis=1)
        shift *= 2
        g //= 2
    return v


def _dice_combine(x, scale, shift, alpha, one_m_alpha):
    x_p = jax.nn.sigmoid(x * scale + shift)
    # alpha*(1-p)*x + p*x  ==  x * (alpha + (1-alpha)*p)
    return x * (alpha + one_m_alpha * x_p)


# --------------------------------------------------------------------------
# Kernels
# --------------------------------------------------------------------------
def _fused_kernel(x_ref, p_ref, o_ref, *, count, eps, groups, emb):
    """Single-pass Dice: stats + BN fold + sigmoid + combine on a VMEM-resident slab."""
    x = x_ref[...].astype(jnp.float32)
    inv_n = jnp.float32(1.0 / count)
    mean = _combine_groups(jnp.sum(x, axis=0, keepdims=True), groups, emb) * inv_n
    xc = x - mean                       # centered second moment -> no cancellation
    var = _combine_groups(jnp.sum(xc * xc, axis=0, keepdims=True), groups, emb) * inv_n
    inv_std = jax.lax.rsqrt(var + jnp.float32(eps))
    gamma, beta = p_ref[0:1, :], p_ref[1:2, :]
    alpha, one_m_alpha = p_ref[2:3, :], p_ref[3:4, :]
    scale = gamma * inv_std
    shift = beta - mean * scale
    o_ref[...] = _dice_combine(x, scale, shift, alpha, one_m_alpha).astype(o_ref.dtype)


def _stats_kernel(x_ref, sum_ref, sq_ref, *, tile_rows, tiles_per_part, valid_rows):
    """Pass 1: per-lane sum / sum-of-squares, row range split across `parts` cores."""
    part = pl.program_id(0)
    step = pl.program_id(1)

    @pl.when(step == 0)
    def _():
        sum_ref[...] = jnp.zeros_like(sum_ref)
        sq_ref[...] = jnp.zeros_like(sq_ref)

    block = part * tiles_per_part + step          # unclamped global row-tile index
    start = block * tile_rows

    def accum(x):
        sum_ref[...] += jnp.sum(x, axis=0, keepdims=True)
        sq_ref[...] += jnp.sum(x * x, axis=0, keepdims=True)

    # Mask only on the partial last tile / clamped duplicate steps; full tiles
    # take the cheap branch (no iota/compare/select work).
    @pl.when(start + tile_rows <= valid_rows)
    def _():
        accum(x_ref[...].astype(jnp.float32))

    @pl.when(start + tile_rows > valid_rows)
    def _():
        x = x_ref[...].astype(jnp.float32)
        row = start + jax.lax.broadcasted_iota(jnp.int32, x.shape, 0)
        accum(jnp.where(row < valid_rows, x, 0.0))


def _apply_kernel(x_ref, sums_ref, sqs_ref, p_ref, o_ref, *, count, eps, groups, emb):
    """Pass 2: fold BN stats into an affine in-kernel, then sigmoid + Dice combine."""
    inv_n = jnp.float32(1.0 / count)
    s = jnp.sum(sums_ref[...], axis=0, keepdims=True)     # combine per-core partials
    sq = jnp.sum(sqs_ref[...], axis=0, keepdims=True)
    s = _combine_groups(s, groups, emb)                   # combine lane groups
    sq = _combine_groups(sq, groups, emb)
    mean = s * inv_n
    # E[x^2] - mean^2 (biased variance, training-mode BN) in f32, clamped at 0.
    var = jnp.maximum(sq * inv_n - mean * mean, 0.0)
    inv_std = jax.lax.rsqrt(var + jnp.float32(eps))
    gamma, beta = p_ref[0:1, :], p_ref[1:2, :]
    alpha, one_m_alpha = p_ref[2:3, :], p_ref[3:4, :]
    scale = gamma * inv_std
    shift = beta - mean * scale
    x = x_ref[...].astype(jnp.float32)
    o_ref[...] = _dice_combine(x, scale, shift, alpha, one_m_alpha).astype(o_ref.dtype)


# --------------------------------------------------------------------------
# Wrapper
# --------------------------------------------------------------------------
def _dice_2d(x, alpha, gamma, beta, eps):
    """x: [M, E]; alpha: [E] or [E, 1]; gamma/beta: [E]."""
    M, E = x.shape
    itemsize = x.dtype.itemsize

    # ---- lane folding: make the last dim a multiple of 128 when possible ----
    G = 128 // math.gcd(E, 128)          # == lcm(E, 128) // E, always a power of 2
    if G > 1 and M % G == 0:
        groups = G
    else:
        groups = 1
        # TODO(synk): when M % G != 0, handle the <G tail rows with a padded last
        # tile instead of falling back to a lane-sparse (E < 128) layout.
    E_f = groups * E
    M_f = M // groups
    x_f = x.reshape(M_f, E_f)

    # ---- per-channel parameters packed into one [8, E_f] operand -------------
    gamma_r = gamma.reshape(E).astype(jnp.float32)
    beta_r = beta.reshape(E).astype(jnp.float32)
    alpha_r = alpha.reshape(E).astype(jnp.float32)
    p = jnp.stack([gamma_r, beta_r, alpha_r, 1.0 - alpha_r], axis=0)   # [4, E]
    p = jnp.tile(p, (1, groups))                                       # [4, E_f]
    p = jnp.concatenate([p, jnp.zeros((4, E_f), jnp.float32)], axis=0)  # [8, E_f]

    common = dict(count=float(M), eps=float(eps), groups=groups, emb=E)
    slab_f32_bytes = M_f * E_f * 4

    # ---------------- fused single-pass path (small / medium M) --------------
    if slab_f32_bytes <= _FUSED_MAX_F32_BYTES:
        out_f = pl.pallas_call(
            functools.partial(_fused_kernel, **common),
            out_shape=jax.ShapeDtypeStruct((M_f, E_f), x.dtype),
            grid=(1,),
            in_specs=[
                pl.BlockSpec((M_f, E_f), lambda i: (0, 0)),
                pl.BlockSpec((8, E_f), lambda i: (0, 0)),
            ],
            out_specs=pl.BlockSpec((M_f, E_f), lambda i: (0, 0)),
            compiler_params=pltpu.CompilerParams(
                dimension_semantics=("arbitrary",),
                vmem_limit_bytes=_VMEM_LIMIT,
            ),
            cost_estimate=pl.CostEstimate(
                flops=int(10 * M * E),
                transcendentals=int(M * E),
                bytes_accessed=int(2 * M * E * itemsize),
            ),
        )(x_f, p)
        return out_f.reshape(M, E)

    # ---------------- two-pass streaming path (large M) ----------------------
    budget_rows = max(8, (_TILE_BYTES // (E_f * 4)) // 8 * 8)   # byte-budgeted tile
    tile_rows = min(M_f, budget_rows)
    num_tiles = pl.cdiv(M_f, tile_rows)
    parts = _STATS_PARTS
    tiles_per_part = pl.cdiv(num_tiles, parts)

    def x_stats_map(c, i):
        # Clamp so grid steps past the end re-read the last tile; their
        # contribution is fully masked inside the kernel.
        return (jnp.minimum(c * tiles_per_part + i, num_tiles - 1), 0)

    sums, sqs = pl.pallas_call(
        functools.partial(_stats_kernel, tile_rows=tile_rows,
                          tiles_per_part=tiles_per_part, valid_rows=M_f),
        out_shape=(
            jax.ShapeDtypeStruct((parts, E_f), jnp.float32),
            jax.ShapeDtypeStruct((parts, E_f), jnp.float32),
        ),
        grid=(parts, tiles_per_part),
        in_specs=[pl.BlockSpec((tile_rows, E_f), x_stats_map)],
        out_specs=(
            pl.BlockSpec((1, E_f), lambda c, i: (c, 0)),
            pl.BlockSpec((1, E_f), lambda c, i: (c, 0)),
        ),
        compiler_params=pltpu.CompilerParams(
            # leading axis "parallel" -> shards the row range across v7x's 2 TCs
            dimension_semantics=("parallel", "arbitrary"),
            vmem_limit_bytes=_VMEM_LIMIT,
        ),
        cost_estimate=pl.CostEstimate(
            flops=int(3 * M * E),
            transcendentals=0,
            bytes_accessed=int(M * E * itemsize),
        ),
    )(x_f)

    out_f = pl.pallas_call(
        functools.partial(_apply_kernel, **common),
        out_shape=jax.ShapeDtypeStruct((M_f, E_f), x.dtype),
        grid=(num_tiles,),
        in_specs=[
            pl.BlockSpec((tile_rows, E_f), lambda i: (i, 0)),
            pl.BlockSpec((parts, E_f), lambda i: (0, 0)),
            pl.BlockSpec((parts, E_f), lambda i: (0, 0)),
            pl.BlockSpec((8, E_f), lambda i: (0, 0)),
        ],
        out_specs=pl.BlockSpec((tile_rows, E_f), lambda i: (i, 0)),
        compiler_params=pltpu.CompilerParams(
            dimension_semantics=("parallel",),
            vmem_limit_bytes=_VMEM_LIMIT,
        ),
        cost_estimate=pl.CostEstimate(
            flops=int(10 * M * E),
            transcendentals=int(M * E),
            bytes_accessed=int(2 * M * E * itemsize),
        ),
    )(x_f, sums, sqs, p)

    return out_f.reshape(M, E)


def dice_forward(x, alpha, gamma, beta, *, dim, eps=1e-8):
    """Pallas implementation of Dice.forward (training-mode BatchNorm stats).

    dim == 2: x [B, E],    alpha [E]
    dim == 3: x [B, N, E], alpha [E, 1]
    """
    assert x.ndim == dim
    if dim == 2:
        return _dice_2d(x, alpha, gamma, beta, eps)
    # dim == 3: BN1d over channel E with stats over (B, N) == flatten + 2-D path.
    B, N, E = x.shape
    out2 = _dice_2d(x.reshape(B * N, E), alpha, gamma, beta, eps)
    return out2.reshape(B, N, E)


# --------------------------------------------------------------------------
# Pure-JAX reference (for sanity checking)
# --------------------------------------------------------------------------
def _dice_ref(x, alpha, gamma, beta, *, dim, eps=1e-8):
    if dim == 3:
        B, N, E = x.shape
        return _dice_ref(x.reshape(B * N, E), alpha.reshape(E), gamma, beta,
                         dim=2, eps=eps).reshape(B, N, E)
    mean = jnp.mean(x, axis=0, keepdims=True)
    var = jnp.mean((x - mean) ** 2, axis=0, keepdims=True)
    x_norm = (x - mean) / jnp.sqrt(var + eps) * gamma + beta
    x_p = jax.nn.sigmoid(x_norm)
    return alpha * (1.0 - x_p) * x + x_p * x


if __name__ == "__main__":
    key = jax.random.PRNGKey(0)
    k2, k3, k4, k5, ka = jax.random.split(key, 5)

    emb_size = 32
    eps = 1e-8

    # Parameters as in the module's __init__ (gamma=1, beta=0, alpha learnable).
    gamma = jnp.ones((emb_size,), jnp.float32)
    beta = jnp.zeros((emb_size,), jnp.float32)
    alpha2d = jnp.zeros((emb_size,), jnp.float32)                    # dim == 2 init
    alpha3d = 0.1 * jax.random.normal(ka, (emb_size, 1), jnp.float32)  # dim == 3 (exercise alpha)

    # dim == 2: [batch, emb]  (fused single-pass, lane-folded to 128 lanes)
    x2 = jax.random.normal(k2, (8, emb_size), jnp.float32)
    out2 = jax.block_until_ready(dice_forward(x2, alpha2d, gamma, beta, dim=2, eps=eps))
    ref2 = _dice_ref(x2, alpha2d, gamma, beta, dim=2, eps=eps)
    assert np.allclose(np.asarray(out2), np.asarray(ref2), atol=1e-5, rtol=1e-5)

    # dim == 3: [batch, num_features, emb]  (fused, lane-folded, nonzero alpha)
    x3 = jax.random.normal(k3, (2, 8, emb_size), jnp.float32)
    out3 = jax.block_until_ready(dice_forward(x3, alpha3d, gamma, beta, dim=3, eps=eps))
    ref3 = _dice_ref(x3, alpha3d, gamma, beta, dim=3, eps=eps)
    assert np.allclose(np.asarray(out3), np.asarray(ref3), atol=1e-5, rtol=1e-5)

    # dim == 2 with M not divisible by the fold factor (lane-sparse fallback path).
    x5 = jax.random.normal(k5, (7, emb_size), jnp.float32)
    out5 = jax.block_until_ready(dice_forward(x5, alpha2d, gamma, beta, dim=2, eps=eps))
    ref5 = _dice_ref(x5, alpha2d, gamma, beta, dim=2, eps=eps)
    assert np.allclose(np.asarray(out5), np.asarray(ref5), atol=1e-5, rtol=1e-5)

    # Larger dim == 2 case: exercises the two-pass path (TC-split stats grid,
    # masked partial last tile, in-kernel BN fold in the apply pass).
    x4 = jax.random.normal(k4, (20000, emb_size), jnp.float32)
    out4 = jax.block_until_ready(dice_forward(x4, alpha2d, gamma, beta, dim=2, eps=eps))
    ref4 = _dice_ref(x4, alpha2d, gamma, beta, dim=2, eps=eps)
    assert np.allclose(np.asarray(out4), np.asarray(ref4), atol=1e-4, rtol=1e-4)

    print("KERNEL_OK")
</pallas_src>

<mosaic_0001>
module attributes {stable_mosaic.version = 11 : i64} {
  func.func @_fused_kernel(%arg0: i32, %arg1: memref<2x128xf32, #tpu.memory_space<vmem>>, %arg2: memref<8x128xf32, #tpu.memory_space<vmem>>, %arg3: memref<2x128xf32, #tpu.memory_space<vmem>>) attributes {dimension_semantics = [#tpu.dimension_semantics<arbitrary>], iteration_bounds = array<i64: 1>, scalar_prefetch = 0 : i64, scratch_operands = 0 : i64, tpu.core_type = #tpu.core_type<tc>, window_params = [{pipeline_mode = #tpu.pipeline_mode<synchronous>, transform_indices = @transform_0, window_bounds = array<i64: 2, 128>}, {pipeline_mode = #tpu.pipeline_mode<synchronous>, transform_indices = @transform_1, window_bounds = array<i64: 8, 128>}, {pipeline_mode = #tpu.pipeline_mode<synchronous>, transform_indices = @transform_2, window_bounds = array<i64: 2, 128>}]} {
    %c0 = arith.constant 0 : index
    %c0_0 = arith.constant 0 : index
    %0 = vector.load %arg1[%c0, %c0_0] : memref<2x128xf32, #tpu.memory_space<vmem>>, vector<2x128xf32>
    %cst = arith.constant dense<0.000000e+00> : vector<128xf32>
    %1 = vector.multi_reduction <add>, %0, %cst [0] : vector<2x128xf32> to vector<128xf32>
    %2 = vector.shape_cast %1 : vector<128xf32> to vector<1x128xf32>
    %c32_i32 = arith.constant 32 : i32
    %3 = tpu.dynamic_rotate %2 by %c32_i32 dim 1 : vector<1x128xf32>, i32 -> vector<1x128xf32>
    %4 = arith.addf %2, %3 : vector<1x128xf32>
    %c64_i32 = arith.constant 64 : i32
    %5 = tpu.dynamic_rotate %4 by %c64_i32 dim 1 : vector<1x128xf32>, i32 -> vector<1x128xf32>
    %6 = arith.addf %4, %5 : vector<1x128xf32>
    %cst_1 = arith.constant 1.250000e-01 : f32
    %7 = vector.broadcast %cst_1 : f32 to vector<1x128xf32>
    %8 = arith.mulf %6, %7 : vector<1x128xf32>
    %9 = vector.broadcast %8 : vector<1x128xf32> to vector<2x128xf32>
    %10 = arith.subf %0, %9 : vector<2x128xf32>
    %11 = arith.mulf %10, %10 : vector<2x128xf32>
    %cst_2 = arith.constant dense<0.000000e+00> : vector<128xf32>
    %12 = vector.multi_reduction <add>, %11, %cst_2 [0] : vector<2x128xf32> to vector<128xf32>
    %13 = vector.shape_cast %12 : vector<128xf32> to vector<1x128xf32>
    %c32_i32_3 = arith.constant 32 : i32
    %14 = tpu.dynamic_rotate %13 by %c32_i32_3 dim 1 : vector<1x128xf32>, i32 -> vector<1x128xf32>
    %15 = arith.addf %13, %14 : vector<1x128xf32>
    %c64_i32_4 = arith.constant 64 : i32
    %16 = tpu.dynamic_rotate %15 by %c64_i32_4 dim 1 : vector<1x128xf32>, i32 -> vector<1x128xf32>
    %17 = arith.addf %15, %16 : vector<1x128xf32>
    %cst_5 = arith.constant 1.250000e-01 : f32
    %18 = vector.broadcast %cst_5 : f32 to vector<1x128xf32>
    %19 = arith.mulf %17, %18 : vector<1x128xf32>
    %cst_6 = arith.constant 9.99999993E-9 : f32
    %20 = vector.broadcast %cst_6 : f32 to vector<1x128xf32>
    %21 = arith.addf %19, %20 : vector<1x128xf32>
    %22 = math.rsqrt %21 : vector<1x128xf32>
    %c0_7 = arith.constant 0 : index
    %c0_8 = arith.constant 0 : index
    %23 = vector.load %arg2[%c0_7, %c0_8] : memref<8x128xf32, #tpu.memory_space<vmem>>, vector<1x128xf32>
    %c1 = arith.constant 1 : index
    %c0_9 = arith.constant 0 : index
    %24 = vector.load %arg2[%c1, %c0_9] : memref<8x128xf32, #tpu.memory_space<vmem>>, vector<1x128xf32>
    %c2 = arith.constant 2 : index
    %c0_10 = arith.constant 0 : index
    %25 = vector.load %arg2[%c2, %c0_10] : memref<8x128xf32, #tpu.memory_space<vmem>>, vector<1x128xf32>
    %c3 = arith.constant 3 : index
    %c0_11 = arith.constant 0 : index
    %26 = vector.load %arg2[%c3, %c0_11] : memref<8x128xf32, #tpu.memory_space<vmem>>, vector<1x128xf32>
    %27 = arith.mulf %23, %22 : vector<1x128xf32>
    %28 = arith.mulf %8, %27 : vector<1x128xf32>
    %29 = arith.subf %24, %28 : vector<1x128xf32>
    %30 = vector.broadcast %27 : vector<1x128xf32> to vector<2x128xf32>
    %31 = arith.mulf %0, %30 : vector<2x128xf32>
    %32 = vector.broadcast %29 : vector<1x128xf32> to vector<2x128xf32>
    %33 = arith.addf %31, %32 : vector<2x128xf32>
    %34 = arith.negf %33 : vector<2x128xf32>
    %35 = math.exp %34 : vector<2x128xf32>
    %cst_12 = arith.constant 1.000000e+00 : f32
    %36 = vector.broadcast %cst_12 : f32 to vector<2x128xf32>
    %37 = arith.addf %36, %35 : vector<2x128xf32>
    %38 = arith.divf %36, %37 : vector<2x128xf32>
    %39 = vector.broadcast %26 : vector<1x128xf32> to vector<2x128xf32>
    %40 = arith.mulf %39, %38 : vector<2x128xf32>
    %41 = vector.broadcast %25 : vector<1x128xf32> to vector<2x128xf32>
    %42 = arith.addf %41, %40 : vector<2x128xf32>
    %43 = arith.mulf %0, %42 : vector<2x128xf32>
    %c0_13 = arith.constant 0 : index
    %c0_14 = arith.constant 0 : index
    %44 = vector.load %arg3[%c0_13, %c0_14] : memref<2x128xf32, #tpu.memory_space<vmem>>, vector<2x128xf32>
    tpu.vector_store %arg3[%c0_13, %c0_14], %43 {strides = array<i32>} : memref<2x128xf32, #tpu.memory_space<vmem>>, vector<2x128xf32>,
    return
  }
  func.func @transform_0(%arg0: i32) -> (i32, i32) {
    %c0_i32 = arith.constant 0 : i32
    %c0_i32_0 = arith.constant 0 : i32
    %c0_i32_1 = arith.constant 0 : i32
    return %c0_i32, %c0_i32_0 : i32, i32
  }
  func.func @transform_1(%arg0: i32) -> (i32, i32) {
    %c0_i32 = arith.constant 0 : i32
    %c0_i32_0 = arith.constant 0 : i32
    %c0_i32_1 = arith.constant 0 : i32
    return %c0_i32, %c0_i32_0 : i32, i32
  }
  func.func @transform_2(%arg0: i32) -> (i32, i32) {
    %c0_i32 = arith.constant 0 : i32
    %c0_i32_0 = arith.constant 0 : i32
    %c0_i32_1 = arith.constant 0 : i32
    return %c0_i32, %c0_i32_0 : i32, i32
  }
}

</mosaic_0001>

<bundles_post_ra>
// kernel: tpu_custom_call.1
= control target key start
LH: loop header
LB: loop body
LE: loop exit
PB: predicated region body
PF: predicated region fallthrough
CT: control target
= control target key end

     0   :  { %7 = vsyncpa [#allocation3], 0  ;;  %s267_s0 = inlined_call_operand.hbm [shape: f32[2,128], index: 0, kind: input, shape index: {}]   ;;  %s268_s1 = inlined_call_operand.hbm [shape: f32[8,128], index: 1, kind: input, shape index: {}]   ;;  %s269_s2 = inlined_call_operand.hbm [shape: f32[2,128], index: 2, kind: output, shape index: {}]  }
   0x1   :  { %8 = vsyncpa [#allocation6], 0 }
   0x2   :  { %9 = vsyncpa [#allocation4], 0  ;;  %s15_s11 = sshll.u32 %s267_s0, 4  ;;  %s230_s12 = smov [#allocation2]   ;;  %s16_s11 = int_to_ptr.hbm [resolvable:$true] %s15_s11 }
   0x3   :  { %s17_s13 = sshll.u32 %s230_s12, 4  ;;  %s26_s16 = sshll.u32 %s268_s1, 4  ;;  %s18_s13 = int_to_ptr.vmem [resolvable:$true] %s17_s13  ;;  %s27_s16 = int_to_ptr.hbm [resolvable:$true] %s26_s16 }
   0x4   :  { %20 = dma.hbm_to_vmem [thread:$0]  %s16_s11, 32, %s18_s13, [#allocation3]  }
   0x5   :  { %s231_s17 = smov [#allocation5]  }
   0x6   :  { %s28_s18 = sshll.u32 %s231_s17, 4  ;;  %s29_s18 = int_to_ptr.vmem [resolvable:$true] %s28_s18 }
   0x7   :  { %31 = dma.hbm_to_vmem [thread:$0]  %s27_s16, 128, %s29_s18, [#allocation6]  }
   0x8   :  { %224 = dma.done.wait [#allocation3], 32  }
   0x9   :  { %225 = vsyncadd [#allocation3], 4294967264 }
   0xa   :  { %226 = dma.done.wait [#allocation6], 128  }
   0xb   :  { %227 = vsyncadd [#allocation6], 4294967168  ;;  %vm41_vm0 = vcmask 1041408   ;;  %v256_v0 = vld [vmem:[#allocation2] sm:$0x3]  ;;  %s232_s0 = smov 32  }
   0xc   :  { %v42_v1 = vsel %vm41_vm0, %v256_v0, 0.0  ;;  %s233_s1 = smov 64   ;;  %v84_v34 = vld [vmem:[#allocation5] sm:$0x1]  ;;  %v85_v38 = vld [vmem:[#allocation5 + $0x1] sm:$0x1] }
   0xd   :  { %v43_v2 = vrot.slane %v42_v1, 4  ;;  %v144_v55 = vld [vmem:[#allocation5 + $0x3] ss:$0 sm:$0xff]  ;;  %v145_v58 = vld [vmem:[#allocation5 + $0x2] ss:$0 sm:$0xff]  ;;  %s234_s19 = smov [#allocation7]  }
   0xe   :  { %s125_s20 = sshll.u32 %s234_s19, 4  ;;  %s127_s23 = sshll.u32 %s269_s2, 4  ;;  %s126_s20 = int_to_ptr.vmem [resolvable:$true] %s125_s20  ;;  %s128_s23 = int_to_ptr.hbm [resolvable:$true] %s127_s23 }
   0xf   :  { %v44_v3 = vadd.f32 %v43_v2, %v42_v1 }
  0x11   :  { %v45_v4 = vrot.slane %v44_v3, 2 }
  0x13   :  { %v46_v5 = vadd.f32 %v45_v4, %v44_v3 }
  0x15   :  { %v47_v6 = vrot.slane %v46_v5, 1 }
  0x17   :  { %v48_v7 = vadd.f32 %v47_v6, %v46_v5 }
  0x19   :  { %49 = vrot.lane.b32.xlu0 %v48_v7, %s232_s0 }
  0x8b   :  { %v50_v8 = vpop.permute.xlu0 %49 }
  0x8c   :  { %v51_v9 = vadd.f32 %v50_v8, %v48_v7 }
  0x8e   :  { %52 = vrot.lane.b32.xlu0 %v51_v9, %s233_s1 }
 0x100   :  { %v53_v10 = vpop.permute.xlu0 %52 }
 0x101   :  { %v54_v11 = vadd.f32 %v53_v10, %v51_v9 }
 0x103   :  { %v55_v12 = vmul.f32 0.125, %v54_v11 }
 0x105   :  { %v56_v13 = vperm.slane %v55_v12, 0 }
 0x107   :  { %v57_v14 = vsub.f32 %v256_v0, %v56_v13 }
 0x109   :  { %v58_v15 = vmul.f32 %v57_v14, %v57_v14 }
 0x10b   :  { %v59_v16 = vsel %vm41_vm0, %v58_v15, 0.0 }
 0x10c   :  { %v60_v17 = vrot.slane %v59_v16, 4 }
 0x10e   :  { %v61_v18 = vadd.f32 %v60_v17, %v59_v16 }
 0x110   :  { %v62_v19 = vrot.slane %v61_v18, 2 }
 0x112   :  { %v63_v20 = vadd.f32 %v62_v19, %v61_v18 }
 0x114   :  { %v64_v21 = vrot.slane %v63_v20, 1 }
 0x116   :  { %v65_v22 = vadd.f32 %v64_v21, %v63_v20 }
 0x118   :  { %66 = vrot.lane.b32.xlu1 %v65_v22, %s232_s0 }
 0x18a   :  { %v67_v23 = vpop.permute.xlu1 %66 }
 0x18b   :  { %v68_v24 = vadd.f32 %v67_v23, %v65_v22 }
 0x18d   :  { %69 = vrot.lane.b32.xlu1 %v68_v24, %s233_s1 }
 0x1ff   :  { %v70_v25 = vpop.permute.xlu1 %69 }
 0x200   :  { %v71_v26 = vadd.f32 %v70_v25, %v68_v24 }
 0x202   :  { %v72_v27 = vmul.f32 0.125, %v71_v26 }
 0x204   :  { %v73_v28 = vadd.f32 1e-08, %v72_v27 }
 0x206   :  { %146 = vrsqrt.f32 %v73_v28  ;;  %vm80_vm2 = vweird.f32 %v73_v28 }
 0x20c   :  { %v147_v29 = vpop.eup %146 }
 0x20d   :  { %v75_v30 = vmul.f32 %v147_v29, %v73_v28  ;;  %vm81_vm1 = vweird.f32 %v147_v29 }
 0x20e   :  { %vm82_vm3 = vmor %vm80_vm2, %vm81_vm1 }
 0x20f   :  { %v76_v31 = vmul.f32 %v147_v29, %v75_v30 }
 0x211   :  { %v77_v32 = vmul.f32 0.5, %v76_v31 }
 0x213   :  { %v78_v33 = vsub.f32 1.5, %v77_v32 }
 0x215   :  { %v79_v35 = vmul.f32 %v147_v29, %v78_v33 }
 0x217   :  { %v83_v36 = vsel %vm82_vm3, %v147_v29, %v79_v35 }
 0x218   :  { %v88_v37 = vmul.f32 %v84_v34, %v83_v36 }
 0x21a   :  { %v89_v39 = vmul.f32 %v88_v37, %v55_v12  ;;  %v91_v40 = vperm.slane %v88_v37, 0 }
 0x21c   :  { %v90_v41 = vsub.f32 %v85_v38, %v89_v39  ;;  %v92_v42 = vmul.f32 %v91_v40, %v256_v0 }
 0x21e   :  { %v93_v43 = vperm.slane %v90_v41, 0 }
 0x220   :  { %v94_v44 = vadd.f32 %v93_v43, %v92_v42 }
 0x222   :  { %v138_v45 = vmul.f32 -1.442695, %v94_v44 }
 0x224   :  { %148 = vpow2.f32 %v138_v45 }
 0x22a   :  { %v149_v46 = vpop.eup %148 }
 0x22b   :  { %v98_v47 = vadd.f32 1.0, %v149_v46 }
 0x22d   :  { %150 = vrcp.f32 %v98_v47  ;;  %v110_v51 = vand.u32 2147483648, %v98_v47  ;;  %v108_v53 = vand.u32 2147483647, %v98_v47  ;;  %vm104_vm5 = vweird.f32 %v98_v47 }
 0x22f   :  { %v111_v56 = vor.u32 1.1754944e-38, %v110_v51  ;;  %vm109_vm7 = vcmp.eq.f32.partialorder %v108_v53, 8.507059e+37 }
 0x233   :  { %v151_v48 = vpop.eup %150 }
 0x234   :  { %v100_v49 = vmul.f32 %v151_v48, %v98_v47  ;;  %vm105_vm4 = vweird.f32 %v151_v48 }
 0x235   :  { %vm106_vm6 = vmor %vm104_vm5, %vm105_vm4 }
 0x236   :  { %v101_v50 = vsub.f32 1.0, %v100_v49 }
 0x238   :  { %v102_v52 = vmul.f32 %v151_v48, %v101_v50 }
 0x23a   :  { %v103_v54 = vadd.f32 %v151_v48, %v102_v52 }
 0x23c   :  { %v107_v57 = vsel %vm106_vm6, %v151_v48, %v103_v54 }
 0x23d   :  { %v112_v59 = vsel %vm109_vm7, %v111_v56, %v107_v57 }
 0x23e   :  { %v115_v60 = vmul.f32 %v144_v55, %v112_v59 }
 0x240   :  { %v117_v61 = vadd.f32 %v145_v58, %v115_v60 }
 0x242   :  { %v118_v62 = vmul.f32 %v117_v61, %v256_v0 }
 0x244   :  { %119 = vst [vmem:[#allocation7] sm:$0x3] %v118_v62 }
 0x245   :  { %130 = dma.vmem_to_hbm [thread:$0]  %s126_s20, 32, %s128_s23, [#allocation4]  }
 0x246   :  { %228 = dma.done.wait [#allocation4], 32  }
 0x247   :  { %229 = vsyncadd [#allocation4], 4294967264 }
 0x248   :  { %135 = vsyncpa [#allocation3], 1 }
 0x249   :  { %136 = vsyncpa [#allocation6], 1 }
 0x24a   :  { %137 = vsyncpa [#allocation4], 1 }

</bundles_post_ra>
